<compile_context>
chip_gen: v5e
topology: v5e:2x2
jax: 0.10.0
libtpu: 0.0.40
codegen_flags: <defaults>
</compile_context>

<pallas_src>
import functools

import jax
import jax.numpy as jnp
from jax.experimental import pallas as pl
from jax.experimental.pallas import tpu as pltpu


def _timestep_embedder_kernel(ts_ref, params_ref, o_ref, *, L, D):
    # ts_ref:     (B, 1) int32   timesteps
    # params_ref: (L + D + 1, D) f32  packed parameter slab:
    #               rows [0, L)       -> fused table  pe @ W1^T + b1   (L, D)
    #               rows [L, L+D)     -> W2^T                          (D, D)
    #               row  [L+D]        -> b2                            (1, D)
    # o_ref:      (B, D) f32
    B = o_ref.shape[0]

    fused = params_ref[0:L, :]                # (L, D)  static slices -> free Ref views
    w2t = params_ref[L:L + D, :]              # (D, D)
    b2 = params_ref[L + D:L + D + 1, :]       # (1, D)

    # Gather of the fused (pe@W1+b1) table via a one-hot MXU matmul
    # (fully vectorized, no dynamic indexing).
    positions = jax.lax.broadcasted_iota(jnp.int32, (B, L), 1)          # (B, L)
    onehot = (positions == ts_ref[...]).astype(jnp.float32)             # (B, L)
    z = jnp.dot(onehot, fused, preferred_element_type=jnp.float32)      # (B, D)

    # SiLU — keep exp/reciprocal on the EUP slot (no VALU divide).
    z = z * jax.nn.sigmoid(z)

    # Second Linear.
    y = jnp.dot(z, w2t, preferred_element_type=jnp.float32) + b2        # (B, D)
    o_ref[...] = y.astype(o_ref.dtype)


def prepare_params(pe, w1, b1, w2, b2):
    """One-time parameter prep (NOT on the per-call path).

    pe: (L, 1, D) positional-encoding buffer (like MDM's PositionalEncoding.pe).
    w1, w2: (D, D) PyTorch nn.Linear weights (out, in).  b1, b2: (D,).

    Returns a single packed (L+D+1, D) f32 slab:
      rows [0, L)   = pe @ W1^T + b1   (Linear1 folded into the table)
      rows [L, L+D) = W2^T             (pre-transposed to (in, out))
      row  L+D      = b2
    """
    L = pe.shape[0]
    D = pe.shape[-1]
    pe2d = pe.reshape(L, D).astype(jnp.float32)
    fused = pe2d @ w1.T + b1                       # (L, D)
    slab = jnp.concatenate(
        [fused, w2.T, b2.reshape(1, D)], axis=0    # (L+D+1, D)
    ).astype(jnp.float32)
    return slab, L, D


def timestep_embedder(timesteps, params_slab, L, D):
    """timesteps: (B,) int. Returns (B, 1, D), matching
    `self.time_embed(self.sequence_pos_encoder.pe[timesteps])` for pe of shape (L, 1, D)."""
    B = timesteps.shape[0]
    ts = timesteps.astype(jnp.int32).reshape(B, 1)

    vmem = pl.BlockSpec(memory_space=pltpu.MemorySpace.VMEM)
    out = pl.pallas_call(
        functools.partial(_timestep_embedder_kernel, L=L, D=D),
        out_shape=jax.ShapeDtypeStruct((B, D), params_slab.dtype),
        in_specs=[vmem, vmem],       # 2 whole-array inputs, single no-grid invocation
        out_specs=vmem,
    )(ts, params_slab)

    # pe is (L, 1, D), so pe[timesteps] is (B, 1, D) -> restore that shape (free reshape).
    return out.reshape(B, 1, D)


if __name__ == "__main__":
    B, D, L = 2, 32, 64   # batch of timesteps, latent_dim, max PE length

    key = jax.random.PRNGKey(0)
    k_ts, kw1, kb1, kw2, kb2 = jax.random.split(key, 5)

    # Sinusoidal positional-encoding table, shape (L, 1, D) like sequence_pos_encoder.pe.
    pos = jnp.arange(L, dtype=jnp.float32)[:, None]
    div = jnp.exp(jnp.arange(0, D, 2, dtype=jnp.float32) * (-jnp.log(10000.0) / D))
    pe = jnp.zeros((L, D), dtype=jnp.float32)
    pe = pe.at[:, 0::2].set(jnp.sin(pos * div))
    pe = pe.at[:, 1::2].set(jnp.cos(pos * div))
    pe = pe.reshape(L, 1, D)

    timesteps = jax.random.randint(k_ts, (B,), 0, L, dtype=jnp.int32)

    # Deterministic init mimicking nn.Linear default: U(-1/sqrt(D), 1/sqrt(D)).
    bound = 1.0 / (D ** 0.5)
    w1 = jax.random.uniform(kw1, (D, D), minval=-bound, maxval=bound, dtype=jnp.float32)
    b1 = jax.random.uniform(kb1, (D,), minval=-bound, maxval=bound, dtype=jnp.float32)
    w2 = jax.random.uniform(kw2, (D, D), minval=-bound, maxval=bound, dtype=jnp.float32)
    b2 = jax.random.uniform(kb2, (D,), minval=-bound, maxval=bound, dtype=jnp.float32)

    # One-time param prep (Linear1 fold + weight transpose + packing) -- off the per-call path.
    params_slab, L_, D_ = prepare_params(pe, w1, b1, w2, b2)
    params_slab = jax.block_until_ready(params_slab)

    out = timestep_embedder(timesteps, params_slab, L_, D_)
    out = jax.block_until_ready(out)

    # Reference in plain JAX (PyTorch semantics: Linear -> SiLU -> Linear on pe[timesteps]).
    h_ref = pe[timesteps]                         # (B, 1, D)
    z_ref = h_ref @ w1.T + b1
    z_ref = z_ref * jax.nn.sigmoid(z_ref)         # SiLU
    ref = z_ref @ w2.T + b2                       # (B, 1, D)

    assert out.shape == (B, 1, D)
    assert jnp.allclose(out, ref, atol=1e-5, rtol=1e-5)

    print("KERNEL_OK")
</pallas_src>

<mosaic_0001>
module attributes {stable_mosaic.version = 11 : i64} {
  func.func @_timestep_embedder_kernel(%arg0: memref<2x1xi32, #tpu.memory_space<vmem>>, %arg1: memref<97x32xf32, #tpu.memory_space<vmem>>, %arg2: memref<2x32xf32, #tpu.memory_space<vmem>>) attributes {dimension_semantics = [], scalar_prefetch = 0 : i64, scratch_operands = 0 : i64, tpu.core_type = #tpu.core_type<tc>} {
    %c0 = arith.constant 0 : index
    %c0_0 = arith.constant 0 : index
    %0 = vector.load %arg1[%c0, %c0_0] : memref<97x32xf32, #tpu.memory_space<vmem>>, vector<64x32xf32>
    %c64 = arith.constant 64 : index
    %c0_1 = arith.constant 0 : index
    %1 = vector.load %arg1[%c64, %c0_1] : memref<97x32xf32, #tpu.memory_space<vmem>>, vector<32x32xf32>
    %c96 = arith.constant 96 : index
    %c0_2 = arith.constant 0 : index
    %2 = vector.load %arg1[%c96, %c0_2] : memref<97x32xf32, #tpu.memory_space<vmem>>, vector<1x32xf32>
    %3 = tpu.iota {dimensions = array<i32: 1>} : vector<2x64xi32>
    %c0_3 = arith.constant 0 : index
    %c0_4 = arith.constant 0 : index
    %4 = vector.load %arg0[%c0_3, %c0_4] : memref<2x1xi32, #tpu.memory_space<vmem>>, vector<2x1xi32>
    %5 = vector.broadcast %4 : vector<2x1xi32> to vector<2x64xi32>
    %6 = arith.cmpi eq, %3, %5 : vector<2x64xi32>
    %7 = arith.extui %6 : vector<2x64xi1> to vector<2x64xi32>
    %8 = arith.sitofp %7 : vector<2x64xi32> to vector<2x64xf32>
    %cst = arith.constant dense<0.000000e+00> : vector<2x32xf32>
    %9 = tpu.matmul %8, %0, %cst {dimension_numbers = #tpu.dot_dimension_numbers<[1], [0], [0], [1], [0, 0, 1, 1], [], []>} : vector<2x64xf32>, vector<64x32xf32>, vector<2x32xf32> -> vector<2x32xf32>
    %10 = arith.negf %9 : vector<2x32xf32>
    %11 = math.exp %10 : vector<2x32xf32>
    %cst_5 = arith.constant 1.000000e+00 : f32
    %12 = vector.broadcast %cst_5 : f32 to vector<2x32xf32>
    %13 = arith.addf %12, %11 : vector<2x32xf32>
    %14 = arith.divf %12, %13 : vector<2x32xf32>
    %15 = arith.mulf %9, %14 : vector<2x32xf32>
    %cst_6 = arith.constant dense<0.000000e+00> : vector<2x32xf32>
    %16 = tpu.matmul %15, %1, %cst_6 {dimension_numbers = #tpu.dot_dimension_numbers<[1], [0], [0], [1], [0, 0, 1, 1], [], []>} : vector<2x32xf32>, vector<32x32xf32>, vector<2x32xf32> -> vector<2x32xf32>
    %17 = vector.broadcast %2 : vector<1x32xf32> to vector<2x32xf32>
    %18 = arith.addf %16, %17 : vector<2x32xf32>
    %c0_7 = arith.constant 0 : index
    %c0_8 = arith.constant 0 : index
    %19 = vector.load %arg2[%c0_7, %c0_8] : memref<2x32xf32, #tpu.memory_space<vmem>>, vector<2x32xf32>
    tpu.vector_store %arg2[%c0_7, %c0_8], %18 {strides = array<i32>} : memref<2x32xf32, #tpu.memory_space<vmem>>, vector<2x32xf32>,
    return
  }
}

</mosaic_0001>

<bundles_post_ra>
// kernel: tpu_custom_call.1
= control target key start
LH: loop header
LB: loop body
LE: loop exit
PB: predicated region body
PF: predicated region fallthrough
CT: control target
= control target key end

     0   :  { %v160_v3 = vmov 0   ;;  %s223_s0 = inlined_call_operand.vmem [shape: s32[2,1], index: 0, kind: input, shape index: {}]   ;;  %s224_s1 = inlined_call_operand.vmem [shape: f32[97,32], index: 1, kind: input, shape index: {}]   ;;  %s225_s2 = inlined_call_operand.hbm [shape: f32[2,32], index: 2, kind: output, shape index: {}]  }
   0x1   :  { %v27_v0 = vld [vmem:[%s223_s0] sm:$0x3]  ;;  %v19_v1 = vld [vmem:[%s224_s1 + $0x38] sm:$0xff]  ;;  %v18_v2 = vld [vmem:[%s224_s1 + $0x30] sm:$0xff]  ;;  %128 = vset.pattern.permute.xlu0 %v160_v3 }
   0x2   :  { %46 = vmatpush.msra.mxu0 %v19_v1  ;;  %29 = vperm.xlu0 %128, %v27_v0   ;;  %v17_v4 = vld [vmem:[%s224_s1 + $0x28] sm:$0xff] }
   0x3   :  { %7 = vsyncpa [#allocation3], 0  ;;  %v16_v5 = vld [vmem:[%s224_s1 + $0x20] sm:$0xff]  ;;  %v15_v6 = vld [vmem:[%s224_s1 + $0x18] sm:$0xff]  ;;  %v25_v10 = vlaneseq  ;;  %vm34_vm0 = vcmask 523264   ;;  %v161_v13 = vmov 0.0  }
   0x4   :  { %47 = vmatpush.msra.mxu0 %v18_v2  ;;  %v14_v7 = vld [vmem:[%s224_s1 + $0x10] sm:$0xff]  ;;  %v13_v8 = vld [vmem:[%s224_s1 + $0x8] sm:$0xff]  ;;  %v12_v9 = vld [vmem:[%s224_s1] sm:$0xff]  ;;  %vm79_vm6 = vcmask 261120   ;;  %s162_s8 = smov [#allocation2]   ;;  %s112_s12 = sshll.u32 %s225_s2, 4  ;;  %s113_s12 = int_to_ptr.hbm [resolvable:$true] %s112_s12 }
   0x5   :  { %v26_v11 = vand.u32 127, %v25_v10  ;;  %v23_v15 = vld [vmem:[%s224_s1 + $0x58] sm:$0xff]  ;;  %v22_v16 = vld [vmem:[%s224_s1 + $0x50] sm:$0xff]  ;;  %v21_v17 = vld [vmem:[%s224_s1 + $0x48] sm:$0xff]  ;;  %s110_s9 = sshll.u32 %s162_s8, 4  ;;  %vm103_vm7 = vcmask 254976   ;;  %s111_s9 = int_to_ptr.vmem [resolvable:$true] %s110_s9 }
   0x6   :  { %48 = vmatpush.msra.mxu0 %v17_v4  ;;  %95 = vmatpush.msra.mxu1 %v23_v15  ;;  %v20_v18 = vld [vmem:[%s224_s1 + $0x40] sm:$0xff] }
   0x7   :  { %v129_v34 = vld [vmem:[%s224_s1 + $0x60] ss:$0 sm:$0xff] }
   0x8   :  { %49 = vmatpush.msra.mxu0 %v16_v5  ;;  %96 = vmatpush.msra.mxu1 %v22_v16 }
   0xa   :  { %50 = vmatpush.msra.mxu0 %v15_v6  ;;  %97 = vmatpush.msra.mxu1 %v21_v17 }
   0xc   :  { %51 = vmatpush.msra.mxu0 %v14_v7  ;;  %98 = vmatpush.msra.mxu1 %v20_v18 }
   0xe   :  { %52 = vmatpush.msra.mxu0 %v13_v8 }
  0x10   :  { %53 = vmatpush.msra.mxu0 %v12_v9 }
  0x74   :  { %v30_v12 = vpop.permute.xlu0 %29 }
  0x75   :  { %vm31_vm1 = vcmp.eq.s32.totalorder %v26_v11, %v30_v12 }
  0x76   :  { %v121_v14 = vsel %vm31_vm1, 1.0, %v161_v13 }
  0x77   :  { %122 = vmatmul.msk.f32.vlgmr.msra.gmra.mxu0 %vm34_vm0, %v121_v14 }
  0xf4   :  { %v55_v19 = vpop.f32.mrf.mxu0 }
  0xf5   :  { %v123_v20 = vmul.f32 -1.442695, %v55_v19 }
  0xf7   :  { %130 = vpow2.f32 %v123_v20 }
  0xfd   :  { %v131_v21 = vpop.eup %130 }
  0xfe   :  { %v61_v22 = vadd.f32 1.0, %v131_v21 }
 0x100   :  { %132 = vrcp.f32 %v61_v22  ;;  %v73_v26 = vand.u32 2147483648, %v61_v22  ;;  %v71_v28 = vand.u32 2147483647, %v61_v22  ;;  %vm67_vm3 = vweird.f32 %v61_v22 }
 0x102   :  { %v74_v30 = vor.u32 1.1754944e-38, %v73_v26  ;;  %vm72_vm5 = vcmp.eq.f32.partialorder %v71_v28, 8.507059e+37 }
 0x106   :  { %v133_v23 = vpop.eup %132 }
 0x107   :  { %v63_v24 = vmul.f32 %v133_v23, %v61_v22  ;;  %vm68_vm2 = vweird.f32 %v133_v23 }
 0x108   :  { %vm69_vm4 = vmor %vm67_vm3, %vm68_vm2 }
 0x109   :  { %v64_v25 = vsub.f32 1.0, %v63_v24 }
 0x10b   :  { %v65_v27 = vmul.f32 %v133_v23, %v64_v25 }
 0x10d   :  { %v66_v29 = vadd.f32 %v133_v23, %v65_v27 }
 0x10f   :  { %v70_v31 = vsel %vm69_vm4, %v133_v23, %v66_v29 }
 0x110   :  { %v75_v32 = vsel %vm72_vm5, %v74_v30, %v70_v31 }
 0x111   :  { %v77_v33 = vmul.f32 %v75_v32, %v55_v19 }
 0x113   :  { %124 = vmatmul.msk.f32.vlgmr.msra.gmra.mxu1 %vm79_vm6, %v77_v33 }
 0x190   :  { %v100_v35 = vpop.f32.mrf.mxu1 }
 0x191   :  { %v101_v36 = vadd.f32 %v129_v34, %v100_v35 }
 0x193   :  { %104 = vst.msk [vmem:[#allocation2] sm:$0x3] %vm103_vm7, %v101_v36 }
 0x194   :  { %115 = dma.vmem_to_hbm [thread:$0]  %s111_s9, 32, %s113_s12, [#allocation3]  }
 0x195   :  { %158 = dma.done.wait [#allocation3], 32  }
 0x196   :  { %159 = vsyncadd [#allocation3], 4294967264 }
 0x197   :  { %120 = vsyncpa [#allocation3], 1 }

</bundles_post_ra>
